<compile_context>
chip_gen: v5e
topology: v5e:2x2
jax: 0.10.0
libtpu: 0.0.40
codegen_flags: <defaults>
</compile_context>

<pallas_src>
import math

import jax
import jax.numpy as jnp
from jax.experimental import pallas as pl
from jax.experimental.pallas import tpu as pltpu

_LANE = 128
_MIN_SPLIT_BLOCK_BYTES = 512 * 1024  # never shrink v7x tiles below this


def _copy_kernel(x_ref, o_ref):
    # Identity copy of the current (tile_r, 128) block: VMEM in -> VMEM out.
    # TODO(synk): an HBM->HBM pltpu.make_async_copy variant (memory_space=pl.ANY)
    # would skip the vld/vst vreg stream entirely; kept as BlockSpec pipelining.
    o_ref[...] = x_ref[...]


def _device_tuning():
    """Per-generation tuning: (per-block byte budget, min total grid steps)."""
    try:
        kind = jax.devices()[0].device_kind.lower()
    except Exception:
        return 2 << 20, 1
    if "v5" in kind:
        # 16 MiB scoped-VMEM default: 4 x 2 MiB resident (in+out, double buf).
        return 2 << 20, 1
    if "v6" in kind:
        # Single TensorCore, 32 MiB scoped default: biggest block wins.
        return 4 << 20, 1
    if "v7" in kind or "7x" in kind:
        # 2 TensorCores, 32 MiB scoped / 64 MiB physical: 4 MiB blocks,
        # aim for >= 4 pipelined steps per core.
        return 4 << 20, 8
    return 2 << 20, 1


def _pick_tile_rows(rows, sub, row_bytes, budget_bytes, min_steps):
    """Row tile: multiple of `sub`, within the byte budget, and (on v7x) small
    enough to give >= min_steps grid steps while keeping blocks >= 512 KiB."""
    max_rows = max(sub, (budget_bytes // row_bytes) // sub * sub)
    tile_r = max(sub, min(max_rows, rows // sub * sub))
    if min_steps > 1 and rows * row_bytes >= min_steps * _MIN_SPLIT_BLOCK_BYTES:
        while pl.cdiv(rows, tile_r) < min_steps:
            cand = (tile_r // 2) // sub * sub
            if cand < sub or cand * row_bytes < _MIN_SPLIT_BLOCK_BYTES:
                break
            tile_r = cand
    return tile_r


def flatten(x: jax.Array, materialize: bool = False, donate: bool = False) -> jax.Array:
    """Pallas equivalent of Flatten.forward: x.view(-1, prod(x.shape[1:])).

    materialize=False (default): metadata-only reshape, exactly PyTorch .view.
    materialize=True: fresh contiguous copy via a roofline Pallas copy kernel.
    donate=True: alias input->output (only a win if the caller donates x).
    """
    n = x.shape[0]
    f = math.prod(x.shape[1:]) if x.ndim > 1 else 1
    out_shape_2d = (n, f)

    if not materialize:
        # Zero-copy fast path: no HBM traffic, no kernel launch.
        return jnp.reshape(x, out_shape_2d)

    total = n * f
    itemsize = jnp.dtype(x.dtype).itemsize
    sub = {4: 8, 2: 16, 1: 32}.get(itemsize, 8)
    chunk = sub * _LANE

    # Lane-/sublane-dense slab: pad the flat buffer to a multiple of sub*128 so
    # the copy never issues masked partial stores, then view it as (rows, 128).
    flat = jnp.reshape(x, (total,))
    padded = pl.cdiv(total, chunk) * chunk
    if padded != total:
        flat = jnp.pad(flat, (0, padded - total))
    rows = padded // _LANE
    slab = jnp.reshape(flat, (rows, _LANE))

    row_bytes = _LANE * itemsize
    budget, min_steps = _device_tuning()
    tile_r = _pick_tile_rows(rows, sub, row_bytes, budget, min_steps)
    grid = (pl.cdiv(rows, tile_r),)

    out = pl.pallas_call(
        _copy_kernel,
        out_shape=jax.ShapeDtypeStruct((rows, _LANE), x.dtype),
        grid_spec=pltpu.PrefetchScalarGridSpec(
            num_scalar_prefetch=0,
            grid=grid,
            in_specs=[pl.BlockSpec((tile_r, _LANE), lambda i: (i, 0))],
            out_specs=pl.BlockSpec((tile_r, _LANE), lambda i: (i, 0)),
        ),
        compiler_params=pltpu.CompilerParams(
            dimension_semantics=("parallel",),
        ),
        cost_estimate=pl.CostEstimate(
            flops=0, transcendentals=0, bytes_accessed=2 * padded * itemsize),
        input_output_aliases=({0: 0} if donate else {}),
    )(slab)

    if padded != total:
        return jnp.reshape(jnp.reshape(out, (padded,))[:total], out_shape_2d)
    return jnp.reshape(out, out_shape_2d)


if __name__ == "__main__":
    key = jax.random.PRNGKey(0)
    # Small NCHW input consistent with an MNIST-style conv feature map.
    x = jax.random.normal(key, (2, 4, 16, 16), dtype=jnp.float32)
    y_ref = jnp.reshape(x, (x.shape[0], -1))

    # Materializing path exercises the Pallas copy kernel (single block here:
    # small inputs never get split, per the small-input bypass).
    y = jax.block_until_ready(flatten(x, materialize=True))
    assert y.shape == (2, 4 * 16 * 16), y.shape
    assert y.dtype == x.dtype
    assert bool(jnp.all(y == y_ref)), "flatten (materialized) mismatch"

    # Default path: metadata-only reshape, matches PyTorch .view semantics.
    y_fast = jax.block_until_ready(flatten(x))
    assert bool(jnp.all(y_fast == y_ref)), "flatten (view) mismatch"

    # Ragged feature size (not a multiple of 128) takes the padded slab path.
    x2 = jax.random.normal(key, (2, 3, 5, 7), dtype=jnp.float32)
    y2 = jax.block_until_ready(flatten(x2, materialize=True))
    assert y2.shape == (2, 3 * 5 * 7)
    assert bool(jnp.all(y2 == jnp.reshape(x2, (2, -1)))), "ragged-path mismatch"

    print("KERNEL_OK")
</pallas_src>

<mosaic_0001>
module attributes {stable_mosaic.version = 11 : i64} {
  func.func @_copy_kernel(%arg0: i32, %arg1: memref<16x128xf32, #tpu.memory_space<vmem>>, %arg2: memref<16x128xf32, #tpu.memory_space<vmem>>) attributes {dimension_semantics = [#tpu.dimension_semantics<parallel>], iteration_bounds = array<i64: 1>, scalar_prefetch = 0 : i64, scratch_operands = 0 : i64, tpu.core_type = #tpu.core_type<tc>, window_params = [{transform_indices = @transform_0, window_bounds = array<i64: 16, 128>}, {transform_indices = @transform_1, window_bounds = array<i64: 16, 128>}]} {
    %c0 = arith.constant 0 : index
    %c0_0 = arith.constant 0 : index
    %0 = vector.load %arg1[%c0, %c0_0] : memref<16x128xf32, #tpu.memory_space<vmem>>, vector<16x128xf32>
    %c0_1 = arith.constant 0 : index
    %c0_2 = arith.constant 0 : index
    %1 = vector.load %arg2[%c0_1, %c0_2] : memref<16x128xf32, #tpu.memory_space<vmem>>, vector<16x128xf32>
    tpu.vector_store %arg2[%c0_1, %c0_2], %0 {strides = array<i32>} : memref<16x128xf32, #tpu.memory_space<vmem>>, vector<16x128xf32>,
    return
  }
  func.func @transform_0(%arg0: i32) -> (i32, i32) {
    %c0_i32 = arith.constant 0 : i32
    %c0_i32_0 = arith.constant 0 : i32
    return %arg0, %c0_i32 : i32, i32
  }
  func.func @transform_1(%arg0: i32) -> (i32, i32) {
    %c0_i32 = arith.constant 0 : i32
    %c0_i32_0 = arith.constant 0 : i32
    return %arg0, %c0_i32 : i32, i32
  }
}

</mosaic_0001>

<bundles_post_ra>
// kernel: tpu_custom_call.1
= control target key start
LH: loop header
LB: loop body
LE: loop exit
PB: predicated region body
PF: predicated region fallthrough
CT: control target
= control target key end

     0   :  { %6 = vsyncpa [#allocation3], 0  ;;  %s124_s0 = inlined_call_operand.hbm [shape: f32[16,128], index: 0, kind: input, shape index: {}]   ;;  %s125_s1 = inlined_call_operand.hbm [shape: f32[16,128], index: 1, kind: output, shape index: {}]  }
   0x1   :  { %7 = vsyncpa [#allocation4], 0  ;;  %s12_s8 = sshll.u32 %s124_s0, 4  ;;  %s104_s9 = smov [#allocation2]   ;;  %s13_s8 = int_to_ptr.hbm [resolvable:$true] %s12_s8 }
   0x2   :  { %s14_s10 = sshll.u32 %s104_s9, 4  ;;  %s105_s11 = smov 128   ;;  %s15_s10 = int_to_ptr.vmem [resolvable:$true] %s14_s10 }
   0x3   :  { %s106_s12 = smov 8  }
   0x4   :  { %20 = dma.hbm_to_vmem [thread:$0]  %s13_s8, 256, %s15_s10, [#allocation3], %s105_s11, %s105_s11, %s106_s12  }
   0x5   :  { %100 = dma.done.wait [#allocation3], 256  }
   0x6   :  { %101 = vsyncadd [#allocation3], 4294967040  ;;  %s107_s13 = smov [#allocation5]   ;;  %s35_s17 = sshll.u32 %s125_s1, 4  ;;  %v25_v0 = vld [vmem:[#allocation2] sm:$0xff]  ;;  %v26_v1 = vld [vmem:[#allocation2 + $0x8] sm:$0xff]  ;;  %s36_s17 = int_to_ptr.hbm [resolvable:$true] %s35_s17 }
   0x7   :  { %s33_s14 = sshll.u32 %s107_s13, 4  ;;  %27 = vst [vmem:[#allocation5] sm:$0xff] %v25_v0  ;;  %s34_s14 = int_to_ptr.vmem [resolvable:$true] %s33_s14 }
   0x8   :  { %28 = vst [vmem:[#allocation5 + $0x8] sm:$0xff] %v26_v1 }
   0x9   :  { %41 = dma.vmem_to_hbm [thread:$0]  %s34_s14, 256, %s36_s17, [#allocation4], %s105_s11, %s105_s11, %s106_s12  }
   0xa   :  { %102 = dma.done.wait [#allocation4], 256  }
   0xb   :  { %103 = vsyncadd [#allocation4], 4294967040 }
   0xc   :  { %46 = vsyncpa [#allocation3], 1 }
   0xd   :  { %47 = vsyncpa [#allocation4], 1 }

</bundles_post_ra>
